<compile_context>
chip_gen: v6e
topology: v6e:2x2x1
jax: 0.10.0
libtpu: 0.0.40
codegen_flags: <defaults>
</compile_context>

<pallas_src>
import functools
import math

import jax
import jax.numpy as jnp
from jax.experimental import pallas as pl
from jax.experimental.pallas import tpu as pltpu


# ---------------- turns-space sin/cos polynomial coefficients ----------------
# sin(pi*r) = r * sum_k S_k r^(2k),  cos(pi*r) = sum_k C_k r^(2k),  |r| <= 0.5
# Taylor coefficients; truncation error ~5.7e-8 (sin) / ~4.7e-7 (cos) on |r|<=0.5.
_PI = math.pi
_SIN_C = tuple((-1.0) ** k * _PI ** (2 * k + 1) / math.factorial(2 * k + 1)
               for k in range(6))
_COS_C = tuple((-1.0) ** k * _PI ** (2 * k) / math.factorial(2 * k)
               for k in range(6))


# ---------------- Pallas kernel ----------------

def _fourier_kernel(x_ref, b_ref, o_ref, *, feat, channels):
    # x_ref: (tm, C) f32, b_ref: (C, F) f32, o_ref: (tm, 2F) f32
    x = x_ref[...]
    b = b_ref[...]

    # theta = x @ B in "turns", as an exact-f32 unrolled VPU outer-product sum
    # (K = channels is tiny; avoids MXU under-utilization and HIGHEST multi-pass).
    theta = x[:, 0:1] * b[0:1, :]
    for c in range(1, channels):
        theta = theta + x[:, c:c + 1] * b[c:c + 1, :]

    # Half-turn range reduction (exact in f32):
    #   2*theta = n + r, n integer, r in [-0.5, 0.5]
    #   sin(2*pi*theta) = (-1)^n * sin(pi*r),  cos(2*pi*theta) = (-1)^n * cos(pi*r)
    t2 = theta * 2.0
    n = jnp.floor(t2 + 0.5)
    r = t2 - n
    parity = n - 2.0 * jnp.floor(n * 0.5)          # 0.0 or 1.0
    sign = 1.0 - 2.0 * parity                      # (-1)^n

    u = r * r                                      # shared between both polynomials
    s0, s1, s2, s3, s4, s5 = _SIN_C
    c0, c1, c2, c3, c4, c5 = _COS_C
    sin_pr = r * (s0 + u * (s1 + u * (s2 + u * (s3 + u * (s4 + u * s5)))))
    cos_pr = c0 + u * (c1 + u * (c2 + u * (c3 + u * (c4 + u * c5))))

    # feat is a multiple of 128 -> both half-stores are lane-dense unmasked vst.
    o_ref[:, :feat] = sign * sin_pr
    o_ref[:, feat:] = sign * cos_pr


# ---------------- wrapper ----------------

def _round_up(n, m):
    return ((n + m - 1) // m) * m


def _derive_tile_m(batch, channels, feat_padded):
    """Pick the batch tile from a VMEM byte budget; keep >= 2 grid steps for v7x's 2 TCs."""
    # Per-row VMEM bytes: double-buffered x/out tiles + ~6 full-width f32 temporaries
    # (theta, r, u, sign, polys) the compiler keeps live inside the kernel.
    bytes_per_row = 4 * (2 * (2 * feat_padded + channels) + 6 * feat_padded)
    budget = 24 * 1024 * 1024                      # tile budget; safe on v7x's 64 MiB VMEM
    rows = max(8, budget // bytes_per_row)
    tile_m = min(1024, (rows // 8) * 8)            # big tiles: ~85% of HBM roofline vs 29% @128

    padded8 = _round_up(batch, 8)
    tile_m = min(tile_m, padded8)
    # Keep at least 2 grid steps so the "parallel" axis can shard across v7x's 2 TensorCores.
    if padded8 // tile_m < 2 and padded8 >= 16:
        tile_m = max(8, ((padded8 // 2) // 8) * 8)
    return tile_m


def gaussian_fourier_features_1d(x, b_all, *, tile_m=None):
    """x: (batch, C); b_all: (C, F) = concat of per-scale B matrices. Returns (batch, 2F) f32."""
    batch, channels = x.shape
    c_b, feat = b_all.shape
    assert c_b == channels, f"expected {channels} channels, got {c_b}"

    x = x.astype(jnp.float32)
    b_all = b_all.astype(jnp.float32)

    # Lane-dense output stores: pad the feature dim to a multiple of 128 (zero columns
    # produce sin(0)/cos(0), sliced off below).
    feat_p = _round_up(feat, 128)
    if feat_p != feat:
        b_all = jnp.pad(b_all, ((0, 0), (0, feat_p - feat)))

    if tile_m is None:
        tile_m = _derive_tile_m(batch, channels, feat_p)
    tile_m = max(8, _round_up(tile_m, 8))

    padded = _round_up(batch, tile_m)
    if padded != batch:
        x = jnp.pad(x, ((0, padded - batch), (0, 0)))

    grid = (padded // tile_m,)
    out = pl.pallas_call(
        functools.partial(_fourier_kernel, feat=feat_p, channels=channels),
        grid=grid,
        in_specs=[
            pl.BlockSpec((tile_m, channels), lambda i: (i, 0)),   # batch-tiled x
            pl.BlockSpec((channels, feat_p), lambda i: (0, 0)),   # B_all resident
        ],
        out_specs=pl.BlockSpec((tile_m, 2 * feat_p), lambda i: (i, 0)),
        out_shape=jax.ShapeDtypeStruct((padded, 2 * feat_p), jnp.float32),
        compiler_params=pltpu.CompilerParams(
            dimension_semantics=("parallel",),
            vmem_limit_bytes=48 * 1024 * 1024),     # v5e scoped default is only 16 MiB
        cost_estimate=pl.CostEstimate(
            flops=2 * padded * channels * feat_p + 30 * padded * feat_p,
            transcendentals=0,
            bytes_accessed=4 * (padded * channels + channels * feat_p
                                + padded * 2 * feat_p)),
    )(x, b_all)

    if padded != batch:
        out = out[:batch]
    if feat_p != feat:
        out = jnp.concatenate([out[:, :feat], out[:, feat_p:feat_p + feat]], axis=1)
    return out


# ---------------- parameter init (mimics torch.randn(C, M) * scale[i]) ----------------

def init_fourier_params(key, num_input_channels, mapping_size, scales):
    keys = jax.random.split(key, len(scales))
    b_list = [jax.random.normal(k, (num_input_channels, mapping_size), jnp.float32) * s
              for k, s in zip(keys, scales)]
    b_all = jnp.concatenate(b_list, axis=1)   # concat_i(x@B_i) == x @ concat_i(B_i)
    return b_list, b_all


# ---------------- pure-JAX reference (matches the torch forward) ----------------

def fourier_reference(x, b_list):
    x = x.astype(jnp.float32)
    X = jnp.concatenate(
        [jnp.dot(x, b, precision=jax.lax.Precision.HIGHEST) for b in b_list], axis=1)
    X = 2.0 * jnp.pi * X
    return jnp.concatenate([jnp.sin(X), jnp.cos(X)], axis=1)


if __name__ == "__main__":
    key = jax.random.PRNGKey(0)

    # --- primary config: F = 128 (lane-aligned), default tile derivation (grid of 2 steps) ---
    batch = 16
    num_input_channels = 4
    mapping_size = 64
    scales = (1.0, 10.0)          # two scales -> F = 128, output (16, 256)

    kx, kb, kb2 = jax.random.split(key, 3)
    x = jax.random.normal(kx, (batch, num_input_channels), jnp.float32)
    b_list, b_all = init_fourier_params(kb, num_input_channels, mapping_size, scales)

    out = gaussian_fourier_features_1d(x, b_all)
    out = jax.block_until_ready(out)
    ref = fourier_reference(x, b_list)
    assert out.shape == (batch, 2 * mapping_size * len(scales))
    assert jnp.allclose(out, ref, atol=1e-3, rtol=1e-3), "mismatch vs JAX reference (F=128)"

    # --- secondary config: F = 96 (not a multiple of 128) exercises the lane-padding path ---
    mapping_size2 = 48
    b_list2, b_all2 = init_fourier_params(kb2, num_input_channels, mapping_size2, scales)
    out2 = gaussian_fourier_features_1d(x, b_all2)
    out2 = jax.block_until_ready(out2)
    ref2 = fourier_reference(x, b_list2)
    assert out2.shape == (batch, 2 * mapping_size2 * len(scales))
    assert jnp.allclose(out2, ref2, atol=1e-3, rtol=1e-3), "mismatch vs JAX reference (F=96)"

    print("KERNEL_OK")
</pallas_src>

<mosaic_0001>
module attributes {stable_mosaic.version = 11 : i64} {
  func.func @_fourier_kernel(%arg0: i32, %arg1: memref<8x4xf32, #tpu.memory_space<vmem>>, %arg2: memref<4x128xf32, #tpu.memory_space<vmem>>, %arg3: memref<8x256xf32, #tpu.memory_space<vmem>>) attributes {dimension_semantics = [#tpu.dimension_semantics<parallel>], iteration_bounds = array<i64: 2>, scalar_prefetch = 0 : i64, scratch_operands = 0 : i64, tpu.core_type = #tpu.core_type<tc>, window_params = [{transform_indices = @transform_0, window_bounds = array<i64: 8, 4>}, {pipeline_mode = #tpu.pipeline_mode<synchronous>, transform_indices = @transform_1, window_bounds = array<i64: 4, 128>}, {transform_indices = @transform_2, window_bounds = array<i64: 8, 256>}]} {
    %c0 = arith.constant 0 : index
    %c0_0 = arith.constant 0 : index
    %0 = vector.load %arg1[%c0, %c0_0] : memref<8x4xf32, #tpu.memory_space<vmem>>, vector<8x4xf32>
    %c0_1 = arith.constant 0 : index
    %c0_2 = arith.constant 0 : index
    %1 = vector.load %arg2[%c0_1, %c0_2] : memref<4x128xf32, #tpu.memory_space<vmem>>, vector<4x128xf32>
    %2 = vector.extract_strided_slice %0 {offsets = [0, 0], sizes = [8, 1], strides = [1, 1]} : vector<8x4xf32> to vector<8x1xf32>
    %3 = vector.extract_strided_slice %1 {offsets = [0, 0], sizes = [1, 128], strides = [1, 1]} : vector<4x128xf32> to vector<1x128xf32>
    %4 = vector.broadcast %2 : vector<8x1xf32> to vector<8x128xf32>
    %5 = vector.broadcast %3 : vector<1x128xf32> to vector<8x128xf32>
    %6 = arith.mulf %4, %5 : vector<8x128xf32>
    %7 = vector.extract_strided_slice %0 {offsets = [0, 1], sizes = [8, 1], strides = [1, 1]} : vector<8x4xf32> to vector<8x1xf32>
    %8 = vector.extract_strided_slice %1 {offsets = [1, 0], sizes = [1, 128], strides = [1, 1]} : vector<4x128xf32> to vector<1x128xf32>
    %9 = vector.broadcast %7 : vector<8x1xf32> to vector<8x128xf32>
    %10 = vector.broadcast %8 : vector<1x128xf32> to vector<8x128xf32>
    %11 = arith.mulf %9, %10 : vector<8x128xf32>
    %12 = arith.addf %6, %11 : vector<8x128xf32>
    %13 = vector.extract_strided_slice %0 {offsets = [0, 2], sizes = [8, 1], strides = [1, 1]} : vector<8x4xf32> to vector<8x1xf32>
    %14 = vector.extract_strided_slice %1 {offsets = [2, 0], sizes = [1, 128], strides = [1, 1]} : vector<4x128xf32> to vector<1x128xf32>
    %15 = vector.broadcast %13 : vector<8x1xf32> to vector<8x128xf32>
    %16 = vector.broadcast %14 : vector<1x128xf32> to vector<8x128xf32>
    %17 = arith.mulf %15, %16 : vector<8x128xf32>
    %18 = arith.addf %12, %17 : vector<8x128xf32>
    %19 = vector.extract_strided_slice %0 {offsets = [0, 3], sizes = [8, 1], strides = [1, 1]} : vector<8x4xf32> to vector<8x1xf32>
    %20 = vector.extract_strided_slice %1 {offsets = [3, 0], sizes = [1, 128], strides = [1, 1]} : vector<4x128xf32> to vector<1x128xf32>
    %21 = vector.broadcast %19 : vector<8x1xf32> to vector<8x128xf32>
    %22 = vector.broadcast %20 : vector<1x128xf32> to vector<8x128xf32>
    %23 = arith.mulf %21, %22 : vector<8x128xf32>
    %24 = arith.addf %18, %23 : vector<8x128xf32>
    %cst = arith.constant 2.000000e+00 : f32
    %25 = vector.broadcast %cst : f32 to vector<8x128xf32>
    %26 = arith.mulf %24, %25 : vector<8x128xf32>
    %cst_3 = arith.constant 5.000000e-01 : f32
    %27 = vector.broadcast %cst_3 : f32 to vector<8x128xf32>
    %28 = arith.addf %26, %27 : vector<8x128xf32>
    %29 = math.floor %28 : vector<8x128xf32>
    %30 = arith.subf %26, %29 : vector<8x128xf32>
    %cst_4 = arith.constant 5.000000e-01 : f32
    %31 = vector.broadcast %cst_4 : f32 to vector<8x128xf32>
    %32 = arith.mulf %29, %31 : vector<8x128xf32>
    %33 = math.floor %32 : vector<8x128xf32>
    %cst_5 = arith.constant 2.000000e+00 : f32
    %34 = vector.broadcast %cst_5 : f32 to vector<8x128xf32>
    %35 = arith.mulf %34, %33 : vector<8x128xf32>
    %36 = arith.subf %29, %35 : vector<8x128xf32>
    %cst_6 = arith.constant 2.000000e+00 : f32
    %37 = vector.broadcast %cst_6 : f32 to vector<8x128xf32>
    %38 = arith.mulf %37, %36 : vector<8x128xf32>
    %cst_7 = arith.constant 1.000000e+00 : f32
    %39 = vector.broadcast %cst_7 : f32 to vector<8x128xf32>
    %40 = arith.subf %39, %38 : vector<8x128xf32>
    %41 = arith.mulf %30, %30 : vector<8x128xf32>
    %cst_8 = arith.constant -0.00737043098 : f32
    %42 = vector.broadcast %cst_8 : f32 to vector<8x128xf32>
    %43 = arith.mulf %41, %42 : vector<8x128xf32>
    %cst_9 = arith.constant 0.0821458846 : f32
    %44 = vector.broadcast %cst_9 : f32 to vector<8x128xf32>
    %45 = arith.addf %44, %43 : vector<8x128xf32>
    %46 = arith.mulf %41, %45 : vector<8x128xf32>
    %cst_10 = arith.constant -0.599264503 : f32
    %47 = vector.broadcast %cst_10 : f32 to vector<8x128xf32>
    %48 = arith.addf %47, %46 : vector<8x128xf32>
    %49 = arith.mulf %41, %48 : vector<8x128xf32>
    %cst_11 = arith.constant 2.55016398 : f32
    %50 = vector.broadcast %cst_11 : f32 to vector<8x128xf32>
    %51 = arith.addf %50, %49 : vector<8x128xf32>
    %52 = arith.mulf %41, %51 : vector<8x128xf32>
    %cst_12 = arith.constant -5.16771269 : f32
    %53 = vector.broadcast %cst_12 : f32 to vector<8x128xf32>
    %54 = arith.addf %53, %52 : vector<8x128xf32>
    %55 = arith.mulf %41, %54 : vector<8x128xf32>
    %cst_13 = arith.constant 3.14159274 : f32
    %56 = vector.broadcast %cst_13 : f32 to vector<8x128xf32>
    %57 = arith.addf %56, %55 : vector<8x128xf32>
    %58 = arith.mulf %30, %57 : vector<8x128xf32>
    %cst_14 = arith.constant -0.0258068908 : f32
    %59 = vector.broadcast %cst_14 : f32 to vector<8x128xf32>
    %60 = arith.mulf %41, %59 : vector<8x128xf32>
    %cst_15 = arith.constant 0.235330626 : f32
    %61 = vector.broadcast %cst_15 : f32 to vector<8x128xf32>
    %62 = arith.addf %61, %60 : vector<8x128xf32>
    %63 = arith.mulf %41, %62 : vector<8x128xf32>
    %cst_16 = arith.constant -1.33526278 : f32
    %64 = vector.broadcast %cst_16 : f32 to vector<8x128xf32>
    %65 = arith.addf %64, %63 : vector<8x128xf32>
    %66 = arith.mulf %41, %65 : vector<8x128xf32>
    %cst_17 = arith.constant 4.05871201 : f32
    %67 = vector.broadcast %cst_17 : f32 to vector<8x128xf32>
    %68 = arith.addf %67, %66 : vector<8x128xf32>
    %69 = arith.mulf %41, %68 : vector<8x128xf32>
    %cst_18 = arith.constant -4.93480206 : f32
    %70 = vector.broadcast %cst_18 : f32 to vector<8x128xf32>
    %71 = arith.addf %70, %69 : vector<8x128xf32>
    %72 = arith.mulf %41, %71 : vector<8x128xf32>
    %cst_19 = arith.constant 1.000000e+00 : f32
    %73 = vector.broadcast %cst_19 : f32 to vector<8x128xf32>
    %74 = arith.addf %73, %72 : vector<8x128xf32>
    %75 = arith.mulf %40, %58 : vector<8x128xf32>
    %c0_20 = arith.constant 0 : index
    %c0_21 = arith.constant 0 : index
    %76 = vector.load %arg3[%c0_20, %c0_21] : memref<8x256xf32, #tpu.memory_space<vmem>>, vector<8x128xf32>
    tpu.vector_store %arg3[%c0_20, %c0_21], %75 {strides = array<i32>} : memref<8x256xf32, #tpu.memory_space<vmem>>, vector<8x128xf32>,
    %77 = arith.mulf %40, %74 : vector<8x128xf32>
    %c0_22 = arith.constant 0 : index
    %c128 = arith.constant 128 : index
    %78 = vector.load %arg3[%c0_22, %c128] : memref<8x256xf32, #tpu.memory_space<vmem>>, vector<8x128xf32>
    tpu.vector_store %arg3[%c0_22, %c128], %77 {strides = array<i32>} : memref<8x256xf32, #tpu.memory_space<vmem>>, vector<8x128xf32>,
    return
  }
  func.func @transform_0(%arg0: i32) -> (i32, i32) {
    %c0_i32 = arith.constant 0 : i32
    %c0_i32_0 = arith.constant 0 : i32
    return %arg0, %c0_i32 : i32, i32
  }
  func.func @transform_1(%arg0: i32) -> (i32, i32) {
    %c0_i32 = arith.constant 0 : i32
    %c0_i32_0 = arith.constant 0 : i32
    %c0_i32_1 = arith.constant 0 : i32
    return %c0_i32, %c0_i32_0 : i32, i32
  }
  func.func @transform_2(%arg0: i32) -> (i32, i32) {
    %c0_i32 = arith.constant 0 : i32
    %c0_i32_0 = arith.constant 0 : i32
    return %arg0, %c0_i32 : i32, i32
  }
}

</mosaic_0001>

<bundles_post_ra>
// kernel: tpu_custom_call.1
= control target key start
LH: loop header
LB: loop body
LE: loop exit
PB: predicated region body
PF: predicated region fallthrough
CT: control target
= control target key end

     0   :  { %7 = vsyncpa [#allocation3], 0  ;;  %s523_s0 = inlined_call_operand.vmem [shape: f32[16,4], index: 0, kind: input, shape index: {}]   ;;  %s524_s1 = inlined_call_operand.vmem [shape: f32[4,128], index: 1, kind: input, shape index: {}]   ;;  %s525_s2 = inlined_call_operand.hbm [shape: f32[16,256], index: 2, kind: output, shape index: {}]  }
   0x1   :  { %9 = vsyncpa [#allocation3 + $0x1], 0  ;;  %s433_s9 = smov 0   ;;  %s435_s10 = smov 0  }
   0x2   :  { %s437_s11 = smov 0   ;;  %s439_s12 = smov 0  }
   0x3 LB: > { %s454_s13 = sadd.s32 4294967295, %s411_s12   ;;  %s291_s14 = sadd.s32 4294967294, %s411_s12   ;;  %s411_s12 = sphi %s439_s12, %s531_s12   ;;  %s407_s11 = sphi %s437_s11, %s530_s11   ;;  %s403_s10 = sphi %s435_s10, %s529_s10   ;;  %s399_s9 = sphi %s433_s9, %s528_s9  }
   0x4   : > { %s458_s15 = sadd.s32 1, %s411_s12   ;;  %s69_s16 = sadd.s32 1, %s407_s11 }
   0x5   : > { %s66_s17 = ssub.s32 %s411_s12, %s458_s15  ;;  %p79_p0 = scmp.ne.s32.totalorder %s407_s11, %s403_s10 }
   0x6   : > { %p67_p1 = scmp.eq.s32.totalorder %s66_s17, 0  ;;  %p80_p2 = scmp.eq.s32.totalorder %s454_s13, 1 }
   0x7   : > { %p85_p3 = scmp.ne.s32.totalorder %s403_s10, %s399_s9  ;;  %p86_p4 = scmp.eq.s32.totalorder %s291_s14, 1 }
   0x8   : > { %s469_s18 = scalar_select %p67_p1, %s407_s11, %s69_s16  }
   0x9   : > { %p471_p5 = por %p80_p2, %p79_p0  ;;  %p475_p6 = por %p86_p4, %p85_p3 }
   0xa   : > { %p294_p7 = scmp.ge.s32.totalorder %s411_s12, 1  ;;  %p114_p8 = scmp.lt.s32.totalorder %s411_s12, 3 }
   0xc   : > { %p115_p9 = pnand %p294_p7, %p114_p8 }
   0xd   : > { %p135_p10 = scmp.lt.s32.totalorder (!%p115_p9), %s454_s13, 1  ;;  %s132_s28 = sand.u32 (!%p115_p9), 1, %s403_s10  }
   0xe   : > { %118 = sbr.rel (%p115_p9) target bundleno = 208 (0xd0), region = 28  ;;  %s295_s29 = sshll.u32 (!%p115_p9), %s132_s28, 4 }
   0xf   : > { %s302_s30 = sshll.u32 (!%p115_p9), %s454_s13, 8  ;;  %s134_s3 = scalar_lea.vmem (!%p115_p9), [#allocation2], %s295_s29 }
  0x10   : > { %s232_s4 = sshll.u32 (!%p115_p9), %s134_s3, 4  ;;  %s230_s7 = scalar_lea.hbm (!%p115_p9), %s525_s2, %s302_s30  ;;  %s233_s4 = int_to_ptr.vmem [resolvable:$true] %s232_s4 }
  0x11   : > { %s218_s8 = scalar_lea.sflag (!%p115_p9), [#allocation3], %s132_s28  ;;  %s351_s14 = scalar_lea.vmem (!%p115_p9), %s233_s4, 256 }
  0x12   : > { %p352_p11 = scmp.ne.s32.totalorder (!%p115_p9), %s233_s4, %s351_s14  ;;  %s417_s16 = smov (!%p115_p9), [#allocation2]  }
  0x13   : > { %v413_v0 = vmov 0   ;;  %v414_v1 = vmov 2   ;;  %s136_s21 = scalar_select %p135_p10, %s454_s13, 1  ;;  %v415_v3 = vmov 1   ;;  %v416_v4 = vmov 3  }
  0x14   : > { %346 = vset.pattern.permute.xlu0 %v413_v0  ;;  %348 = vset.pattern.permute.xlu1 %v414_v1  ;;  %v146_v5 = vlaneseq  ;;  %v140_v9 = vld [vmem:[%s524_s1] sm:$0xf]  ;;  %p353_p12 = pnand %p352_p11, %p471_p5  ;;  %s355_s13 = sshll.u32 %s417_s16, 4  ;;  %s356_s13 = int_to_ptr.vmem [resolvable:$false] %s355_s13 }
  0x15   : > { %s296_s22 = sshll.u32 %s136_s21, 3  ;;  %s357_s17 = scalar_lea.vmem %s356_s13, 512 }
  0x16   : > { %s138_s25 = scalar_lea.vmem %s523_s0, %s296_s22  ;;  %v147_v6 = vshrl.u32 %v146_v5, 7  ;;  %p354_p13 = pneg %p353_p12 }
  0x17   : > { %v139_v2 = vld [vmem:[%s138_s25] sm:$0xff]  ;;  %p358_p0 = scmp.lt.s32.totalorder %s233_s4, %s356_s13  ;;  %p359_p1 = scmp.lt.s32.totalorder %s357_s17, %s351_s14 }
  0x18   : > { %143 = vperm.xlu0 %346, %v139_v2   ;;  %162 = vperm.xlu1 %348, %v139_v2   ;;  %v148_v7 = vsub.s32 0, %v147_v6  ;;  %v157_v8 = vsub.s32 1, %v147_v6  ;;  %v167_v11 = vsub.s32 2, %v147_v6  ;;  %v177_v13 = vsub.s32 3, %v147_v6 }
  0x19   : > { %p360_p2 = por %p359_p1, %p358_p0 }
  0x1a   : > { %v149_v14 = vrot.slane %v140_v9, %v148_v7  ;;  %v158_v15 = vrot.slane %v140_v9, %v157_v8  ;;  %v168_v16 = vrot.slane %v140_v9, %v167_v11  ;;  %v178_v17 = vrot.slane %v140_v9, %v177_v13 }
  0x1b   : > { %p361_p3 = pnand %p360_p2, %p354_p13 }
  0x1c   : > { %347 = vset.pattern.permute.xlu0 %v415_v3  ;;  %349 = vset.pattern.permute.xlu1 %v416_v4 }
  0x1d   : > { %152 = vperm.xlu0 %347, %v139_v2   ;;  %172 = vperm.xlu1 %349, %v139_v2  }
  0x21   : > { %350 = vset.pattern.permute.xlu0 %v416_v4 }
  0x93   : > { %v144_v10 = vpop.permute.xlu0 %143  ;;  %v163_v12 = vpop.permute.xlu1 %162 }
  0x94   : > { %v150_v20 = vmul.f32 %v149_v14, %v144_v10  ;;  %v169_v22 = vmul.f32 %v168_v16, %v163_v12 }
  0x98   : > { %v153_v18 = vpop.permute.xlu0 %152  ;;  %v173_v19 = vpop.permute.xlu1 %172 }
  0x99   : > { %v159_v21 = vmul.f32 %v158_v15, %v153_v18  ;;  %v179_v24 = vmul.f32 %v178_v17, %v173_v19 }
  0x9b   : > { %v160_v23 = vadd.f32 %v159_v21, %v150_v20 }
  0x9d   : > { %v170_v25 = vadd.f32 %v169_v22, %v160_v23 }
  0x9f   : > { %v180_v26 = vadd.f32 %v179_v24, %v170_v25 }
  0xa1   : > { %v181_v27 = vmul.f32 2.0, %v180_v26 }
  0xa3   : > { %v182_v28 = vadd.f32 0.5, %v181_v27 }
  0xa5   : > { %v183_v29 = vfloor.f32 %v182_v28 }
  0xa7   : > { %v184_v30 = vsub.f32 %v181_v27, %v183_v29  ;;  %v185_v31 = vmul.f32 0.5, %v183_v29 }
  0xa9   : > { %v191_v32 = vmul.f32 %v184_v30, %v184_v30  ;;  %v186_v35 = vfloor.f32 %v185_v31 }
  0xab   : > { %v192_v33 = vmul.f32 -0.007370431, %v191_v32  ;;  %v203_v34 = vmul.f32 -0.02580689, %v191_v32  ;;  %v187_v40 = vmul.f32 2.0, %v186_v35 }
  0xad   : > { %v193_v36 = vadd.f32 0.082145885, %v192_v33  ;;  %v204_v37 = vadd.f32 0.23533063, %v203_v34  ;;  %v188_v45 = vsub.f32 %v183_v29, %v187_v40 }
  0xaf   : > { %v194_v38 = vmul.f32 %v193_v36, %v191_v32  ;;  %v205_v39 = vmul.f32 %v204_v37, %v191_v32  ;;  %v189_v51 = vmul.f32 2.0, %v188_v45 }
  0xb1   : > { %v195_v41 = vadd.f32 -0.5992645, %v194_v38  ;;  %v206_v42 = vadd.f32 -1.3352628, %v205_v39  ;;  %v190_v56 = vsub.f32 1.0, %v189_v51 }
  0xb3   : > { %v196_v43 = vmul.f32 %v195_v41, %v191_v32  ;;  %v207_v44 = vmul.f32 %v206_v42, %v191_v32 }
  0xb5   : > { %v197_v46 = vadd.f32 2.550164, %v196_v43  ;;  %v208_v47 = vadd.f32 4.058712, %v207_v44 }
  0xb7   : > { %v198_v48 = vmul.f32 %v197_v46, %v191_v32  ;;  %v209_v49 = vmul.f32 %v208_v47, %v191_v32 }
  0xb9   : > { %v199_v50 = vadd.f32 -5.1677127, %v198_v48  ;;  %v210_v52 = vadd.f32 -4.934802, %v209_v49 }
  0xbb   : > { %v200_v53 = vmul.f32 %v199_v50, %v191_v32  ;;  %v211_v54 = vmul.f32 %v210_v52, %v191_v32 }
  0xbd   : > { %v201_v55 = vadd.f32 3.1415927, %v200_v53  ;;  %v212_v57 = vadd.f32 1.0, %v211_v54 }
  0xbf   : > { %v202_v58 = vmul.f32 %v201_v55, %v184_v30  ;;  %v215_v59 = vmul.f32 %v212_v57, %v190_v56 }
  0xc1   : > { %v213_v60 = vmul.f32 %v202_v58, %v190_v56  ;;  %216 = vst [vmem:[%s134_s3 + $0x8] sm:$0xff] %v215_v59 }
  0xc3   : > { %214 = vst [vmem:[%s134_s3] sm:$0xff] %v213_v60 }
  0xc4   : > { %364 = shalt.err (!%p361_p3)
}
  0xc5   : > { %s365_s21 = scalar_lea.hbm %s230_s7, 256  ;;  %s369_s24 = scalar_lea.hbm %s525_s2, 512 }
  0xc6   : > { %p366_p4 = scmp.ne.s32.totalorder %s230_s7, %s365_s21  ;;  %p370_p9 = scmp.lt.s32.totalorder %s230_s7, %s525_s2 }
  0xc7   : > { %p371_p10 = scmp.lt.s32.totalorder %s369_s24, %s365_s21 }
  0xc8   : > { %p367_p7 = pnand %p366_p4, %p471_p5 }
  0xc9   : > { %p372_p11 = por %p371_p10, %p370_p9 }
  0xca   : > { %p368_p8 = pneg %p367_p7 }
  0xcc   : > { %p373_p12 = pnand %p372_p11, %p368_p8 }
  0xce   : > { %376 = shalt.err (!%p373_p12)
}
  0xcf   : > { %303 = dma.vmem_to_hbm [thread:$0]  (%p471_p5), %s233_s4, 256, %s230_s7, %s218_s8  }
  0xd0 PF: > { %p309_p13 = scmp.ge.s32.totalorder %s411_s12, 2  ;;  %s244_s27 = sand.u32 1, %s399_s9  }
  0xd1   : > { %s245_s28 = scalar_lea.sflag [#allocation3], %s244_s27 }
  0xd2   : > { %p306_p0 = pnand %p309_p13, %p475_p6 }
  0xd4   : > { %p307_p1 = pneg %p306_p0 }
  0xd6   : > { %394 = dma.done.wait (%p307_p1), %s245_s28, 256  }
  0xd7   : > { %396 = vsyncadd (%p307_p1), %s245_s28, 4294967040  ;;  %p12_p2 = scmp.ge.s32.totalorder %s458_s15, 4   ;;  %s528_s9 = smov %s403_s10 }
  0xd8   : > { %s529_s10 = smov %s407_s11  ;;  %s530_s11 = smov %s469_s18 }
  0xd9   : > { %s531_s12 = smov %s458_s15  ;;  %14 = sbr.rel (!%p12_p2) target bundleno = 3 (0x3), region = 63 }
  0xde   :  { %250 = vsyncpa [#allocation3], 1 }
  0xdf   :  { %252 = vsyncpa [#allocation3 + $0x1], 1 }

</bundles_post_ra>
